<compile_context>
chip_gen: v7x
topology: tpu7x:2x2x1
jax: 0.10.0
libtpu: 0.0.40
codegen_flags: <defaults>
</compile_context>

<pallas_src>
import jax
import jax.numpy as jnp
from jax.experimental import pallas as pl
from jax.experimental.pallas import tpu as pltpu


def decoder_kernel(x_ref, w1t_ref, b1_ref, w2t_ref, b2_ref, o_ref):
    """One batch tile:  o = relu(x @ W1.T + b1) @ W2.T + b2.

    Shapes inside the kernel (TB = batch-tile rows, on sublanes):
      x_ref:  (TB, 5)    w1t_ref: (5, 10)    b1_ref: (1, 10)
      w2t_ref: (10, 22)  b2_ref:  (1, 22)    o_ref:  (TB, 22)
    """
    x = x_ref[...]
    h = jnp.dot(x, w1t_ref[...], preferred_element_type=jnp.float32)   # (TB, 10)
    h = jnp.maximum(h + b1_ref[...], 0.0)                              # bias + ReLU (VPU)
    y = jnp.dot(h, w2t_ref[...], preferred_element_type=jnp.float32)   # (TB, 22)
    o_ref[...] = (y + b2_ref[...]).astype(o_ref.dtype)


def _round_up(a, m):
    return ((a + m - 1) // m) * m


def decoder_forward(x, w1, b1, w2, b2, *, batch_tile=8192):
    """x: (B, 5); w1: (10, 5); b1: (10,); w2: (22, 10); b2: (22,).

    Weights are in torch nn.Linear layout (out_features, in_features).
    Returns (B, 22) == relu(x @ w1.T + b1) @ w2.T + b2, in float32.
    """
    B, in_dim = x.shape
    hid_dim = w1.shape[0]
    out_dim = w2.shape[0]

    # Tile choice:
    #  * tiny batches -> one full-batch block (block == full dim is always legal)
    #  * otherwise a tile that is a multiple of 8 rows (sublane granularity),
    #    capped so there are >= 2 grid steps (keeps both v7x TCs busy) and by
    #    `batch_tile` so the double-buffered VMEM footprint stays bounded.
    if B <= 1024:
        tb = B
    else:
        half = _round_up(pl.cdiv(B, 2), 128)
        tb = min(batch_tile, half)
        tb = _round_up(tb, 8)
    grid = (pl.cdiv(B, tb),)

    # One-time tiny host-side reshapes (5x10 / 10x22 / bias rows): negligible.
    w1t = w1.T                      # (5, 10)
    w2t = w2.T                      # (10, 22)
    b1r = b1.reshape(1, hid_dim)    # row biases broadcast across the tile rows
    b2r = b2.reshape(1, out_dim)

    out = pl.pallas_call(
        decoder_kernel,
        out_shape=jax.ShapeDtypeStruct((B, out_dim), jnp.float32),
        grid=grid,
        in_specs=[
            pl.BlockSpec((tb, in_dim), lambda i: (i, 0)),        # x tile (pipelined)
            pl.BlockSpec((in_dim, hid_dim), lambda i: (0, 0)),   # VMEM-resident weights
            pl.BlockSpec((1, hid_dim), lambda i: (0, 0)),
            pl.BlockSpec((hid_dim, out_dim), lambda i: (0, 0)),
            pl.BlockSpec((1, out_dim), lambda i: (0, 0)),
        ],
        out_specs=pl.BlockSpec((tb, out_dim), lambda i: (i, 0)),
        compiler_params=pltpu.CompilerParams(
            dimension_semantics=("parallel",),
            vmem_limit_bytes=48 * 1024 * 1024,
        ),
    )(x, w1t, b1r, w2t, b2r)

    return out


def init_params(key):
    """Deterministic init mimicking torch.nn.Linear defaults
    (uniform(-1/sqrt(fan_in), 1/sqrt(fan_in))), stored in torch (out, in) layout."""
    k1, k2, k3, k4 = jax.random.split(key, 4)
    bound1 = 1.0 / jnp.sqrt(5.0)
    w1 = jax.random.uniform(k1, (10, 5), jnp.float32, -bound1, bound1)
    b1 = jax.random.uniform(k2, (10,), jnp.float32, -bound1, bound1)
    bound2 = 1.0 / jnp.sqrt(10.0)
    w2 = jax.random.uniform(k3, (22, 10), jnp.float32, -bound2, bound2)
    b2 = jax.random.uniform(k4, (22,), jnp.float32, -bound2, bound2)
    return w1, b1, w2, b2


if __name__ == "__main__":
    key = jax.random.PRNGKey(0)
    k_x, k_x2, k_p = jax.random.split(key, 3)
    w1, b1, w2, b2 = init_params(k_p)

    def ref_fn(xx):  # pure-JAX reference, torch semantics
        return jnp.maximum(xx @ w1.T + b1, 0.0) @ w2.T + b2

    # Small batch: single grid step (tile == batch).
    batch = 8
    x = jax.random.normal(k_x, (batch, 5), dtype=jnp.float32)
    out = jax.block_until_ready(decoder_forward(x, w1, b1, w2, b2))
    assert out.shape == (batch, 22), out.shape
    assert jnp.allclose(out, ref_fn(x), atol=1e-5, rtol=1e-5), "mismatch (small batch)"

    # Larger batch: exercises the tiled, pipelined grid (2 steps on default
    # settings) including a partial last tile.
    batch2 = 1300
    x2 = jax.random.normal(k_x2, (batch2, 5), dtype=jnp.float32)
    out2 = jax.block_until_ready(decoder_forward(x2, w1, b1, w2, b2))
    assert out2.shape == (batch2, 22), out2.shape
    assert jnp.allclose(out2, ref_fn(x2), atol=1e-5, rtol=1e-5), "mismatch (tiled batch)"

    print("KERNEL_OK")
</pallas_src>

<mosaic_0001>
module attributes {stable_mosaic.version = 11 : i64} {
  func.func @decoder_kernel(%arg0: i32, %arg1: memref<8x5xf32, #tpu.memory_space<vmem>>, %arg2: memref<5x10xf32, #tpu.memory_space<vmem>>, %arg3: memref<1x10xf32, #tpu.memory_space<vmem>>, %arg4: memref<10x22xf32, #tpu.memory_space<vmem>>, %arg5: memref<1x22xf32, #tpu.memory_space<vmem>>, %arg6: memref<8x22xf32, #tpu.memory_space<vmem>>) attributes {dimension_semantics = [#tpu.dimension_semantics<parallel>], iteration_bounds = array<i64: 1>, scalar_prefetch = 0 : i64, scratch_operands = 0 : i64, tpu.core_type = #tpu.core_type<tc>, window_params = [{transform_indices = @transform_0, window_bounds = array<i64: 8, 5>}, {pipeline_mode = #tpu.pipeline_mode<synchronous>, transform_indices = @transform_1, window_bounds = array<i64: 5, 10>}, {pipeline_mode = #tpu.pipeline_mode<synchronous>, transform_indices = @transform_2, window_bounds = array<i64: 1, 10>}, {pipeline_mode = #tpu.pipeline_mode<synchronous>, transform_indices = @transform_3, window_bounds = array<i64: 10, 22>}, {pipeline_mode = #tpu.pipeline_mode<synchronous>, transform_indices = @transform_4, window_bounds = array<i64: 1, 22>}, {transform_indices = @transform_5, window_bounds = array<i64: 8, 22>}]} {
    %c0 = arith.constant 0 : index
    %c0_0 = arith.constant 0 : index
    %0 = vector.load %arg1[%c0, %c0_0] : memref<8x5xf32, #tpu.memory_space<vmem>>, vector<8x5xf32>
    %c0_1 = arith.constant 0 : index
    %c0_2 = arith.constant 0 : index
    %1 = vector.load %arg2[%c0_1, %c0_2] : memref<5x10xf32, #tpu.memory_space<vmem>>, vector<5x10xf32>
    %cst = arith.constant dense<0.000000e+00> : vector<8x10xf32>
    %2 = tpu.matmul %0, %1, %cst {dimension_numbers = #tpu.dot_dimension_numbers<[1], [0], [0], [1], [0, 0, 1, 1], [], []>} : vector<8x5xf32>, vector<5x10xf32>, vector<8x10xf32> -> vector<8x10xf32>
    %c0_3 = arith.constant 0 : index
    %c0_4 = arith.constant 0 : index
    %3 = vector.load %arg3[%c0_3, %c0_4] : memref<1x10xf32, #tpu.memory_space<vmem>>, vector<1x10xf32>
    %4 = vector.broadcast %3 : vector<1x10xf32> to vector<8x10xf32>
    %5 = arith.addf %2, %4 : vector<8x10xf32>
    %cst_5 = arith.constant 0.000000e+00 : f32
    %6 = vector.broadcast %cst_5 : f32 to vector<8x10xf32>
    %7 = arith.maximumf %5, %6 : vector<8x10xf32>
    %c0_6 = arith.constant 0 : index
    %c0_7 = arith.constant 0 : index
    %8 = vector.load %arg4[%c0_6, %c0_7] : memref<10x22xf32, #tpu.memory_space<vmem>>, vector<10x22xf32>
    %cst_8 = arith.constant dense<0.000000e+00> : vector<8x22xf32>
    %9 = tpu.matmul %7, %8, %cst_8 {dimension_numbers = #tpu.dot_dimension_numbers<[1], [0], [0], [1], [0, 0, 1, 1], [], []>} : vector<8x10xf32>, vector<10x22xf32>, vector<8x22xf32> -> vector<8x22xf32>
    %c0_9 = arith.constant 0 : index
    %c0_10 = arith.constant 0 : index
    %10 = vector.load %arg5[%c0_9, %c0_10] : memref<1x22xf32, #tpu.memory_space<vmem>>, vector<1x22xf32>
    %11 = vector.broadcast %10 : vector<1x22xf32> to vector<8x22xf32>
    %12 = arith.addf %9, %11 : vector<8x22xf32>
    %c0_11 = arith.constant 0 : index
    %c0_12 = arith.constant 0 : index
    %13 = vector.load %arg6[%c0_11, %c0_12] : memref<8x22xf32, #tpu.memory_space<vmem>>, vector<8x22xf32>
    tpu.vector_store %arg6[%c0_11, %c0_12], %12 {strides = array<i32>} : memref<8x22xf32, #tpu.memory_space<vmem>>, vector<8x22xf32>,
    return
  }
  func.func @transform_0(%arg0: i32) -> (i32, i32) {
    %c0_i32 = arith.constant 0 : i32
    %c0_i32_0 = arith.constant 0 : i32
    return %arg0, %c0_i32 : i32, i32
  }
  func.func @transform_1(%arg0: i32) -> (i32, i32) {
    %c0_i32 = arith.constant 0 : i32
    %c0_i32_0 = arith.constant 0 : i32
    %c0_i32_1 = arith.constant 0 : i32
    return %c0_i32, %c0_i32_0 : i32, i32
  }
  func.func @transform_2(%arg0: i32) -> (i32, i32) {
    %c0_i32 = arith.constant 0 : i32
    %c0_i32_0 = arith.constant 0 : i32
    %c0_i32_1 = arith.constant 0 : i32
    return %c0_i32, %c0_i32_0 : i32, i32
  }
  func.func @transform_3(%arg0: i32) -> (i32, i32) {
    %c0_i32 = arith.constant 0 : i32
    %c0_i32_0 = arith.constant 0 : i32
    %c0_i32_1 = arith.constant 0 : i32
    return %c0_i32, %c0_i32_0 : i32, i32
  }
  func.func @transform_4(%arg0: i32) -> (i32, i32) {
    %c0_i32 = arith.constant 0 : i32
    %c0_i32_0 = arith.constant 0 : i32
    %c0_i32_1 = arith.constant 0 : i32
    return %c0_i32, %c0_i32_0 : i32, i32
  }
  func.func @transform_5(%arg0: i32) -> (i32, i32) {
    %c0_i32 = arith.constant 0 : i32
    %c0_i32_0 = arith.constant 0 : i32
    return %arg0, %c0_i32 : i32, i32
  }
}

</mosaic_0001>

<bundles_post_ra>
// kernel: tpu_custom_call.1
= control target key start
LH: loop header
LB: loop body
LE: loop exit
PB: predicated region body
PF: predicated region fallthrough
CT: control target
= control target key end

     0   :  { %10 = vsyncpa [#allocation3], 0  ;;  %s476_s0 = inlined_call_operand.hbm [shape: f32[8,5], index: 0, kind: input, shape index: {}]   ;;  %s477_s1 = inlined_call_operand.hbm [shape: f32[5,10], index: 1, kind: input, shape index: {}]   ;;  %s478_s2 = inlined_call_operand.vmem [shape: f32[1,10], index: 2, kind: input, shape index: {}]   ;;  %s479_s3 = inlined_call_operand.hbm [shape: f32[10,22], index: 3, kind: input, shape index: {}]   ;;  %s480_s4 = inlined_call_operand.vmem [shape: f32[1,22], index: 4, kind: input, shape index: {}]   ;;  %s481_s5 = inlined_call_operand.hbm [shape: f32[8,22], index: 5, kind: output, shape index: {}]  }
   0x1   :  { %11 = vsyncpa [#allocation6], 0 }
   0x2   :  { %12 = vsyncpa [#allocation4], 0  ;;  %s382_s18 = smov [#allocation5]   ;;  %s383_s20 = smov [#allocation2]  }
   0x3   :  { %s29_s19 = sshll.u32 %s382_s18, 4  ;;  %s19_s21 = sshll.u32 %s383_s20, 4  ;;  %s30_s19 = int_to_ptr.vmem [resolvable:$true] %s29_s19  ;;  %s20_s21 = int_to_ptr.vmem [resolvable:$true] %s19_s21 }
   0x4   :  { %s288_s24 = scalar_lea.hbm %s477_s1, 128 }
   0x5   :  { %p289_p0 = scmp.ne.s32.totalorder %s477_s1, %s288_s24  ;;  %p292_p1 = scmp.lt.u32.totalorder %s288_s24, %s477_s1 }
   0x7   :  { %p294_p2 = pnand %p292_p1, %p289_p0 }
   0x9   :  { %297 = shalt.err (!%p294_p2)
}
   0xa   :  { %s298_s29 = scalar_lea.vmem %s30_s19, 128  ;;  %p303_p4 = scmp.lt.s32.totalorder %s30_s19, %s30_s19 }
   0xb   :  { %p299_p3 = scmp.ne.s32.totalorder %s30_s19, %s298_s29  ;;  %p304_p5 = scmp.lt.s32.totalorder %s298_s29, %s298_s29 }
   0xd   :  { %p305_p6 = por %p304_p5, %p303_p4 }
   0xf   :  { %p306_p7 = pnand %p305_p6, %p299_p3 }
  0x11   :  { %309 = shalt.err (!%p306_p7)
}
  0x12   :  { %32 = dma.hbm_to_vmem [thread:$0]  %s477_s1, 128, %s30_s19, [#allocation6]  }
  0x13   :  { %s310_s9 = scalar_lea.hbm %s476_s0, 128 }
  0x14   :  { %p311_p8 = scmp.ne.s32.totalorder %s476_s0, %s310_s9  ;;  %p314_p9 = scmp.lt.u32.totalorder %s310_s9, %s476_s0 }
  0x16   :  { %p316_p10 = pnand %p314_p9, %p311_p8 }
  0x18   :  { %319 = shalt.err (!%p316_p10)
}
  0x19   :  { %s320_s14 = scalar_lea.vmem %s20_s21, 128  ;;  %p325_p12 = scmp.lt.s32.totalorder %s20_s21, %s20_s21 }
  0x1a   :  { %p321_p11 = scmp.ne.s32.totalorder %s20_s21, %s320_s14  ;;  %p326_p13 = scmp.lt.s32.totalorder %s320_s14, %s320_s14 }
  0x1c   :  { %p327_p0 = por %p326_p13, %p325_p12 }
  0x1e   :  { %p328_p1 = pnand %p327_p0, %p321_p11 }
  0x20   :  { %331 = shalt.err (!%p328_p1)
}
  0x21   :  { %22 = dma.hbm_to_vmem [thread:$0]  %s476_s0, 128, %s20_s21, [#allocation3]  }
  0x22   :  { %s384_s16 = smov [#allocation7]   ;;  %s332_s20 = scalar_lea.hbm %s479_s3, 256 }
  0x23   :  { %s40_s17 = sshll.u32 %s384_s16, 4  ;;  %p333_p2 = scmp.ne.s32.totalorder %s479_s3, %s332_s20  ;;  %s41_s17 = int_to_ptr.vmem [resolvable:$true] %s40_s17 }
  0x24   :  { %p336_p3 = scmp.lt.u32.totalorder %s332_s20, %s479_s3 }
  0x26   :  { %p338_p4 = pnand %p336_p3, %p333_p2 }
  0x28   :  { %341 = shalt.err (!%p338_p4)
}
  0x29   :  { %s342_s26 = scalar_lea.vmem %s41_s17, 256  ;;  %p347_p6 = scmp.lt.s32.totalorder %s41_s17, %s41_s17 }
  0x2a   :  { %p343_p5 = scmp.ne.s32.totalorder %s41_s17, %s342_s26  ;;  %p348_p7 = scmp.lt.s32.totalorder %s342_s26, %s342_s26 }
  0x2c   :  { %p349_p8 = por %p348_p7, %p347_p6 }
  0x2e   :  { %p350_p9 = pnand %p349_p8, %p343_p5 }
  0x30   :  { %353 = shalt.err (!%p350_p9)
}
  0x31   :  { %s385_s0 = smov 128   ;;  %s386_s21 = smov 8  }
  0x32   :  { %46 = dma.hbm_to_vmem [thread:$0]  %s479_s3, 256, %s41_s17, [#allocation6], %s385_s0, %s385_s0, %s386_s21  }
  0x33   :  { %376 = dma.done.wait [#allocation3], 128  }
  0x34   :  { %377 = vsyncadd [#allocation3], 4294967168 }
  0x35   :  { %378 = dma.done.wait [#allocation6], 384  }
  0x36   :  { %379 = vsyncadd [#allocation6], 4294966912  ;;  %v387_v0 = vmov 0.0   ;;  %vm388_vm0 = vmmov 0   ;;  %vm71_vm1 = vcmask 1044480   ;;  %vm67_vm2 = vcmask 39936  }
  0x37   :  { %262 = vmatprep.subr.mxu0 %v387_v0  ;;  %264 = vmatprep.mubr.msk.f32.mxu0 %vm388_vm0, %v387_v0  ;;  %v59_v1 = vld [vmem:[#allocation5] sm:$0x1f]  ;;  %v58_v2 = vld [vmem:[#allocation2] sm:$0xff]  ;;  %v146_v3 = vld [vmem:[#allocation7] sm:$0xff]  ;;  %vm159_vm3 = vcmask 1041408   ;;  %v389_v6 = vmov 0.0|0.0  }
  0x38   :  { %271 = vmatprep.mubr.msk.f32.mxu1 %vm388_vm0, %v387_v0  ;;  %263 = vmatpush3.msk.msra.mxu0 %vm71_vm1, %v59_v1  ;;  %v147_v4 = vld [vmem:[#allocation7 + $0x8] sm:$0x3]  ;;  %vm390_vm4 = vmmov 1   ;;  %v251_v7 = vld [vmem:[%s478_s2] ss:$0 sm:$0xff]  ;;  %vm155_vm6 = vcmask 80896  }
  0x39   :  { %265 = vmatmul.mubr.msk.f32.vlgmr.msra.gmra.mrb[0].mxu0 %vm67_vm2, %v58_v2  ;;  %v275_v5 = vpack.c.bf16 %v147_v4, %v146_v3  ;;  %274 = vmatprep.subr.bf16.mxu1 %v389_v6  ;;  %vm276_vm5 = vmpackc.low %vm159_vm3, %vm390_vm4  ;;  %v254_v12 = vld [vmem:[%s480_s4] ss:$0 sm:$0xff]  ;;  %s391_s7 = smov [#allocation8]   ;;  %vm233_vm7 = vcmask 179200  }
  0x3a   :  { %s241_s8 = sshll.u32 %s391_s7, 4  ;;  %s242_s8 = int_to_ptr.vmem [resolvable:$true] %s241_s8 }
  0x3b   :  { %277 = vmatpush3.bf16.msk.msra.mxu1 %vm276_vm5, %v275_v5  ;;  %s354_s9 = scalar_lea.vmem %s242_s8, 128  ;;  %p359_p11 = scmp.lt.s32.totalorder %s242_s8, %s242_s8 }
  0x3c   :  { %p355_p10 = scmp.ne.s32.totalorder %s242_s8, %s354_s9  ;;  %p360_p12 = scmp.lt.s32.totalorder %s354_s9, %s354_s9 }
  0x3e   :  { %p361_p13 = por %p360_p12, %p359_p11 }
  0x40   :  { %p362_p0 = pnand %p361_p13, %p355_p10 }
 0x10c   :  { %v141_v8 = vpop.f32.mrb[0].mxu0 }
 0x10d   :  { %v142_v9 = vadd.f32 %v251_v7, %v141_v8  ;;  %v266_v10 = vpop.f32.mrb[1].mxu0 }
 0x10f   :  { %v145_v11 = vmax.f32 %v142_v9, 0.0 }
 0x111   :  { %272 = vmatmul.mubr.msk.f32.vlgmr.msra.gmra.mrb[0].mxu1 %vm155_vm6, %v145_v11 }
 0x1e4   :  { %v229_v13 = vpop.f32.mrb[0].mxu1 }
 0x1e5   :  { %v230_v14 = vadd.f32 %v254_v12, %v229_v13  ;;  %v273_v15 = vpop.f32.mrb[1].mxu1 }
 0x1e7   :  { %234 = vst.msk [vmem:[#allocation8] sm:$0xff] %vm233_vm7, %v230_v14 }
 0x1e8   :  { %365 = shalt.err (!%p362_p0)
}
 0x1e9   :  { %s366_s11 = scalar_lea.hbm %s481_s5, 128 }
 0x1ea   :  { %p367_p1 = scmp.ne.s32.totalorder %s481_s5, %s366_s11  ;;  %p370_p2 = scmp.lt.u32.totalorder %s366_s11, %s481_s5 }
 0x1ec   :  { %p372_p3 = pnand %p370_p2, %p367_p1 }
 0x1ee   :  { %375 = shalt.err (!%p372_p3)
}
 0x1ef   :  { %244 = dma.vmem_to_hbm [thread:$0]  %s242_s8, 128, %s481_s5, [#allocation4]  }
 0x1f0   :  { %380 = dma.done.wait [#allocation4], 128  }
 0x1f1   :  { %381 = vsyncadd [#allocation4], 4294967168 }
 0x1f2   :  { %248 = vsyncpa [#allocation3], 1 }
 0x1f3   :  { %249 = vsyncpa [#allocation6], 1 }
 0x1f4   :  { %250 = vsyncpa [#allocation4], 1 }

</bundles_post_ra>
